<compile_context>
chip_gen: v6e
topology: v6e:2x2x1
jax: 0.10.0
libtpu: 0.0.40
codegen_flags: <defaults>
</compile_context>

<pallas_src>
import jax
import jax.numpy as jnp
from jax.experimental import pallas as pl
from jax.experimental.pallas import tpu as pltpu


_MAX_CHUNK_ROWS = 256  # rows per in-kernel compute slice (f32 working-set cap)


def _round_up(n, m):
    return ((n + m - 1) // m) * m


def _vmem_capacity_bytes():
    """Physical per-core VMEM (falls back to the smallest, v7x-safe value)."""
    try:
        return int(pltpu.get_tpu_info().vmem_capacity_bytes)
    except Exception:
        return 64 * 1024 * 1024


def _num_tensorcores():
    """TensorCores per chip: 2 on v7x (megacore), 1 on v5e/v6e."""
    try:
        kind = jax.devices()[0].device_kind.lower()
        if "v7" in kind:
            return 2
    except Exception:
        pass
    return 1


def _pick_chunk_rows(tile_rows):
    """Largest compute-chunk (<=256 rows) that evenly divides the tile."""
    if tile_rows <= _MAX_CHUNK_ROWS:
        return tile_rows
    for c in (256, 128, 64, 32, 16, 8):
        if tile_rows % c == 0:
            return c
    return tile_rows


def _pick_tile_rows(rows, hidden, itemsize, vmem_cap, num_cores):
    """Largest row tile that fits VMEM once I/O buffers AND f32 scratch count."""
    rows8 = max(8, _round_up(rows, 8))

    # VMEM accounting:
    #   I/O: 2x input + 2x output double-buffered tiles -> 4*hidden*itemsize/row.
    #   Compute scratch: ~3 f32 chunk-sized temporaries (x upcast, x*x, y),
    #   bounded by the in-kernel chunking (independent of tile_rows), + f32 weight.
    io_per_row = 4 * hidden * itemsize
    scratch = 3 * _MAX_CHUNK_ROWS * hidden * 4 + 2 * hidden * 4
    budget = max(int(vmem_cap * 0.7) - scratch, io_per_row * 8)
    max_rows = max(8, budget // io_per_row)

    tile = min(1024, (max_rows // 8) * 8, rows8)
    tile = max(8, tile)

    if num_cores > 1:
        # v7x megacore: prefer >= 4 even-sized steps per core, while keeping each
        # step >= ~256 rows so the ~0.35us per-step overhead stays negligible.
        floor = 256
        for steps in (4 * num_cores, 2 * num_cores):
            if rows8 >= steps * floor:
                cand = _round_up(pl.cdiv(rows8, steps), 8)
                tile = min(tile, cand)
                break

    # Keep the tile a multiple of the compute chunk so the in-kernel loop is exact.
    if tile > _MAX_CHUNK_ROWS:
        tile = (tile // _MAX_CHUNK_ROWS) * _MAX_CHUNK_ROWS
    return tile


def _rmsnorm_kernel(x_ref, w_ref, o_ref, *, eps, chunk_rows):
    # x_ref/o_ref: (tile_rows, hidden) blocks in VMEM; w_ref: (1, hidden) f32.
    w = w_ref[...]  # loaded once per grid step
    n_chunks = x_ref.shape[0] // chunk_rows

    def body(c, carry):
        r = pl.multiple_of(c * chunk_rows, chunk_rows)
        x = x_ref[pl.ds(r, chunk_rows), :].astype(jnp.float32)
        var = jnp.mean(x * x, axis=-1, keepdims=True)   # per-row mean of squares
        y = w * (x * jax.lax.rsqrt(var + eps))          # broadcast over rows
        o_ref[pl.ds(r, chunk_rows), :] = y.astype(o_ref.dtype)
        return carry

    # Unrolled so the LLO scheduler sees the (small, static) chunk loop.
    jax.lax.fori_loop(0, n_chunks, body, 0, unroll=True)


def rmsnorm(x, weight, eps=1e-5, tile_rows=None):
    """RMSNorm over the last axis of x. x: (..., hidden), weight: (hidden,)."""
    orig_shape = x.shape
    hidden = orig_shape[-1]
    x2d = x.reshape(-1, hidden)
    rows = x2d.shape[0]
    itemsize = x2d.dtype.itemsize

    vmem_cap = _vmem_capacity_bytes()
    num_cores = _num_tensorcores()
    if tile_rows is None:
        tile_rows = _pick_tile_rows(rows, hidden, itemsize, vmem_cap, num_cores)
    chunk_rows = _pick_chunk_rows(tile_rows)

    # Weight cast once here (not per grid step inside the kernel).
    w2d = weight.astype(jnp.float32).reshape(1, hidden)

    grid = (pl.cdiv(rows, tile_rows),)

    # Scoped-VMEM limit: double-buffered I/O tiles + chunked f32 compute scratch
    # + headroom, capped safely below physical capacity (valid on v7x's 64 MiB,
    # and large enough to override v5e's 16 MiB default scoped limit).
    io_bytes = 4 * tile_rows * hidden * itemsize
    scratch_bytes = 3 * chunk_rows * hidden * 4 + 2 * hidden * 4
    vmem_limit = min(int(vmem_cap * 0.9),
                     max(io_bytes + scratch_bytes + (8 << 20), 32 << 20))

    # Advisory hint so XLA overlaps neighbouring ops with this HBM-bound call.
    cost = pl.CostEstimate(
        flops=3 * rows * hidden,
        transcendentals=rows,
        bytes_accessed=2 * rows * hidden * itemsize + hidden * 4,
    )

    out = pl.pallas_call(
        lambda x_ref, w_ref, o_ref: _rmsnorm_kernel(
            x_ref, w_ref, o_ref, eps=eps, chunk_rows=chunk_rows),
        out_shape=jax.ShapeDtypeStruct((rows, hidden), x.dtype),
        grid_spec=pltpu.PrefetchScalarGridSpec(
            num_scalar_prefetch=0,
            grid=grid,
            in_specs=[
                pl.BlockSpec((tile_rows, hidden), lambda i: (i, 0)),
                pl.BlockSpec((1, hidden), lambda i: (0, 0)),
            ],
            out_specs=pl.BlockSpec((tile_rows, hidden), lambda i: (i, 0)),
        ),
        compiler_params=pltpu.CompilerParams(
            dimension_semantics=("parallel",),
            vmem_limit_bytes=int(vmem_limit),
        ),
        cost_estimate=cost,
    )(x2d, w2d)

    return out.reshape(orig_shape)


def rmsnorm_ref(x, weight, eps=1e-5):
    xf = x.astype(jnp.float32)
    var = jnp.mean(xf * xf, axis=-1, keepdims=True)
    y = xf * jax.lax.rsqrt(var + eps)
    return (weight.astype(jnp.float32) * y).astype(x.dtype)


if __name__ == "__main__":
    key = jax.random.PRNGKey(0)
    batch, seq, hidden = 2, 8, 32
    x = jax.random.normal(key, (batch, seq, hidden), dtype=jnp.float32)
    # Deterministic parameter init matching nn.Parameter(torch.ones(hidden_size))
    weight = jnp.ones((hidden,), dtype=jnp.float32)

    out = rmsnorm(x, weight, eps=1e-5)
    out = jax.block_until_ready(out)

    ref = rmsnorm_ref(x, weight, eps=1e-5)
    assert out.shape == x.shape
    assert jnp.allclose(out, ref, atol=1e-5, rtol=1e-5), "mismatch vs reference"

    print("KERNEL_OK")
</pallas_src>

<mosaic_0001>
module attributes {stable_mosaic.version = 11 : i64} {
  func.func @_lambda_(%arg0: i32, %arg1: memref<16x32xf32, #tpu.memory_space<vmem>>, %arg2: memref<1x32xf32, #tpu.memory_space<vmem>>, %arg3: memref<16x32xf32, #tpu.memory_space<vmem>>) attributes {dimension_semantics = [#tpu.dimension_semantics<parallel>], iteration_bounds = array<i64: 1>, scalar_prefetch = 0 : i64, scratch_operands = 0 : i64, tpu.core_type = #tpu.core_type<tc>, window_params = [{transform_indices = @transform_0, window_bounds = array<i64: 16, 32>}, {pipeline_mode = #tpu.pipeline_mode<synchronous>, transform_indices = @transform_1, window_bounds = array<i64: 1, 32>}, {transform_indices = @transform_2, window_bounds = array<i64: 16, 32>}]} {
    %c0 = arith.constant 0 : index
    %c0_0 = arith.constant 0 : index
    %0 = vector.load %arg2[%c0, %c0_0] : memref<1x32xf32, #tpu.memory_space<vmem>>, vector<1x32xf32>
    %c0_i32 = arith.constant 0 : i32
    %c16_i32 = arith.constant 16 : i32
    %1 = arith.muli %c0_i32, %c16_i32 : i32
    %2 = tpu.assume_multiple %1, 16 : i32
    %3 = arith.index_cast %2 : i32 to index
    %c0_1 = arith.constant 0 : index
    %4 = vector.load %arg1[%3, %c0_1] : memref<16x32xf32, #tpu.memory_space<vmem>>, vector<16x32xf32>
    %5 = arith.mulf %4, %4 : vector<16x32xf32>
    %cst = arith.constant dense<0.000000e+00> : vector<16xf32>
    %6 = vector.multi_reduction <add>, %5, %cst [1] : vector<16x32xf32> to vector<16xf32>
    %7 = vector.shape_cast %6 : vector<16xf32> to vector<16x1xf32>
    %cst_2 = arith.constant 3.200000e+01 : f32
    %8 = vector.broadcast %cst_2 : f32 to vector<16x1xf32>
    %9 = arith.divf %7, %8 : vector<16x1xf32>
    %cst_3 = arith.constant 9.99999974E-6 : f32
    %10 = vector.broadcast %cst_3 : f32 to vector<16x1xf32>
    %11 = arith.addf %9, %10 : vector<16x1xf32>
    %12 = math.rsqrt %11 : vector<16x1xf32>
    %13 = vector.broadcast %12 : vector<16x1xf32> to vector<16x32xf32>
    %14 = arith.mulf %4, %13 : vector<16x32xf32>
    %15 = vector.broadcast %0 : vector<1x32xf32> to vector<16x32xf32>
    %16 = arith.mulf %15, %14 : vector<16x32xf32>
    %17 = arith.index_cast %2 : i32 to index
    %c0_4 = arith.constant 0 : index
    %18 = vector.load %arg3[%17, %c0_4] : memref<16x32xf32, #tpu.memory_space<vmem>>, vector<16x32xf32>
    tpu.vector_store %arg3[%17, %c0_4], %16 {strides = array<i32>} : memref<16x32xf32, #tpu.memory_space<vmem>>, vector<16x32xf32>,
    %c1_i32 = arith.constant 1 : i32
    return
  }
  func.func @transform_0(%arg0: i32) -> (i32, i32) {
    %c0_i32 = arith.constant 0 : i32
    %c0_i32_0 = arith.constant 0 : i32
    return %arg0, %c0_i32 : i32, i32
  }
  func.func @transform_1(%arg0: i32) -> (i32, i32) {
    %c0_i32 = arith.constant 0 : i32
    %c0_i32_0 = arith.constant 0 : i32
    %c0_i32_1 = arith.constant 0 : i32
    return %c0_i32, %c0_i32_0 : i32, i32
  }
  func.func @transform_2(%arg0: i32) -> (i32, i32) {
    %c0_i32 = arith.constant 0 : i32
    %c0_i32_0 = arith.constant 0 : i32
    return %arg0, %c0_i32 : i32, i32
  }
}

</mosaic_0001>

<bundles_post_ra>
// kernel: tpu_custom_call.1
= control target key start
LH: loop header
LB: loop body
LE: loop exit
PB: predicated region body
PF: predicated region fallthrough
CT: control target
= control target key end

     0   :  { %7 = vsyncpa [#allocation3], 0  ;;  %s165_s0 = inlined_call_operand.hbm [shape: f32[16,32], index: 0, kind: input, shape index: {}]   ;;  %s166_s1 = inlined_call_operand.vmem [shape: f32[1,32], index: 1, kind: input, shape index: {}]   ;;  %s167_s2 = inlined_call_operand.hbm [shape: f32[16,32], index: 2, kind: output, shape index: {}]  }
   0x1   :  { %8 = vsyncpa [#allocation4], 0  ;;  %s127_s9 = smov [#allocation2]  }
   0x2   :  { %s14_s10 = sshll.u32 %s127_s9, 4  ;;  %s15_s10 = int_to_ptr.vmem [resolvable:$true] %s14_s10 }
   0x3   :  { %s91_s11 = scalar_lea.vmem %s15_s10, 256  ;;  %p96_p1 = scmp.lt.s32.totalorder %s15_s10, %s15_s10 }
   0x4   :  { %p92_p0 = scmp.ne.s32.totalorder %s15_s10, %s91_s11  ;;  %p97_p2 = scmp.lt.s32.totalorder %s91_s11, %s91_s11 }
   0x6   :  { %p98_p3 = por %p97_p2, %p96_p1 }
   0x8   :  { %p99_p4 = pnand %p98_p3, %p92_p0 }
   0xa   :  { %102 = shalt.err (!%p99_p4)
}
   0xb   :  { %s128_s12 = smov 128   ;;  %s129_s13 = smov 8  }
   0xc   :  { %20 = dma.hbm_to_vmem [thread:$0]  %s165_s0, 256, %s15_s10, [#allocation3], %s128_s12, %s128_s12, %s129_s13  }
   0xd   :  { %123 = dma.done.wait [#allocation3], 256  }
   0xe   :  { %124 = vsyncadd [#allocation3], 4294967040  ;;  %v27_v0 = vld [vmem:[#allocation2] sm:$0xff]  ;;  %vm31_vm0 = vcmask 261120   ;;  %v28_v1 = vld [vmem:[#allocation2 + $0x8] sm:$0xff]  ;;  %s130_s17 = smov [#allocation5]  }
   0xf   :  { %v29_v2 = vmul.f32 %v27_v0, %v27_v0  ;;  %v30_v3 = vmul.f32 %v28_v1, %v28_v1  ;;  %v74_v13 = vld [vmem:[%s166_s1] ss:$0 sm:$0xff]  ;;  %s62_s18 = sshll.u32 %s130_s17, 4  ;;  %s63_s18 = int_to_ptr.vmem [resolvable:$true] %s62_s18 }
  0x10   :  { %s103_s19 = scalar_lea.vmem %s63_s18, 256  ;;  %p108_p6 = scmp.lt.s32.totalorder %s63_s18, %s63_s18 }
  0x11   :  { %v32_v4 = vsel %vm31_vm0, %v29_v2, 0.0  ;;  %v35_v5 = vsel %vm31_vm0, %v30_v3, 0.0  ;;  %p104_p5 = scmp.ne.s32.totalorder %s63_s18, %s103_s19  ;;  %p109_p7 = scmp.lt.s32.totalorder %s103_s19, %s103_s19 }
  0x12   :  { %33 = vadd.xlane.f32.xlu0 %v32_v4 }
  0x13   :  { %p110_p8 = por %p109_p7, %p108_p6 }
  0x15   :  { %p111_p9 = pnand %p110_p8, %p104_p5 }
  0x16   :  { %36 = vadd.xlane.f32.xlu0 %v35_v5 }
  0x9b   :  { %v34_v6 = vpop.xlane.xlu0 %33 }
  0x9c   :  { %v39_v7 = vmul.f32 0.03125, %v34_v6 }
  0x9e   :  { %v41_v8 = vadd.f32 1e-05, %v39_v7 }
  0x9f   :  { %v37_v9 = vpop.xlane.xlu0 %36 }
  0xa0   :  { %79 = vrsqrt.f32 %v41_v8  ;;  %v40_v10 = vmul.f32 0.03125, %v37_v9 }
  0xa2   :  { %v42_v11 = vadd.f32 1e-05, %v40_v10 }
  0xa4   :  { %81 = vrsqrt.f32 %v42_v11 }
  0xad   :  { %v80_v12 = vpop.eup %79 }
  0xae   :  { %v45_v14 = vmul.f32 %v80_v12, %v27_v0 }
  0xb0   :  { %v53_v15 = vmul.f32 %v74_v13, %v45_v14 }
  0xb1   :  { %v82_v16 = vpop.eup %81 }
  0xb2   :  { %v46_v17 = vmul.f32 %v82_v16, %v28_v1  ;;  %55 = vst.msk [vmem:[#allocation5] sm:$0xff] %vm31_vm0, %v53_v15 }
  0xb4   :  { %v54_v18 = vmul.f32 %v74_v13, %v46_v17 }
  0xb6   :  { %56 = vst.msk [vmem:[#allocation5 + $0x8] sm:$0xff] %vm31_vm0, %v54_v18 }
  0xb7   :  { %114 = shalt.err (!%p111_p9)
}
  0xb8   :  { %68 = dma.vmem_to_hbm [thread:$0]  %s63_s18, 256, %s167_s2, [#allocation4], %s128_s12, %s128_s12, %s129_s13  }
  0xb9   :  { %125 = dma.done.wait [#allocation4], 256  }
  0xba   :  { %126 = vsyncadd [#allocation4], 4294967040 }
  0xbb   :  { %72 = vsyncpa [#allocation3], 1 }
  0xbc   :  { %73 = vsyncpa [#allocation4], 1 }

</bundles_post_ra>
